<compile_context>
chip_gen: v7x
topology: tpu7x:2x2x1
jax: 0.10.0
libtpu: 0.0.40
codegen_flags: <defaults>
</compile_context>

<pallas_src>
import jax
import jax.numpy as jnp
from jax.experimental import pallas as pl
from jax.experimental.pallas import tpu as pltpu


# ---------------------------------------------------------------------------
# One-time parameter preparation (hoisted out of the per-call forward path).
# ---------------------------------------------------------------------------
def _banded_conv_weights(w_oihw, in_cols, out_cols, col_offset):
    """Per-kernel-row banded matmul weights for a 3-wide conv.

    Returns (3, in_cols*Cin, out_cols*Cout) f32 where, for kernel row dh,
    entry [dh, p*Cin + c, j*Cout + co] = w[co, c, dh, p - j + col_offset]
    when that tap index is in [0, 3), else 0.  A packed activation row
    (in_cols*Cin,) @ this matrix = the packed output-row contribution of dh.
    Out-of-range column taps get zero weights, i.e. zero column padding is
    folded into the band (no data-side column pad needed).
    """
    Cout, Cin, KH, KW = w_oihw.shape
    j = jnp.arange(out_cols)
    mats = []
    for dh in range(KH):
        m = jnp.zeros((in_cols, Cin, out_cols, Cout), jnp.float32)
        for dw in range(KW):
            tap = w_oihw[:, :, dh, dw].T.astype(jnp.float32)          # (Cin, Cout)
            p = j + dw - col_offset
            valid = (p >= 0) & (p < in_cols)
            vals = jnp.where(valid[:, None, None], tap[None, :, :], 0.0)
            m = m.at[jnp.clip(p, 0, in_cols - 1), :, j, :].add(vals)
        mats.append(m.reshape(in_cols * Cin, out_cols * Cout))
    return jnp.stack(mats, axis=0)


def _pool_selection_matrix(W, Cout):
    """Combined 0/1 selection matrix (W*Cout, 2*(W//2)*Cout):
    lanes [0 : W2*Cout] pick even output columns, lanes [W2*Cout :] pick odd."""
    W2 = W // 2
    idx = jnp.arange(W2 * Cout)
    j2, co = idx // Cout, idx % Cout
    sel = jnp.zeros((W * Cout, 2 * W2 * Cout), jnp.float32)
    sel = sel.at[(2 * j2) * Cout + co, idx].set(1.0)
    sel = sel.at[(2 * j2 + 1) * Cout + co, W2 * Cout + idx].set(1.0)
    return sel


def prepare_cnn_block_params(w1, b1, w2, b2, H, W):
    """Build kernel-ready packed weights ONCE (parameter-init time)."""
    del H  # banded weights depend only on W
    Cout, Cin = int(w1.shape[0]), int(w1.shape[1])
    Cmid = int(w2.shape[1])
    assert Cmid == Cout, "conv2 in-channels must equal conv1 out-channels"
    K1 = W * Cin
    K1p = ((K1 + 127) // 128) * 128          # lane-pad conv1 K to full vreg groups
    WCout = W * Cout

    w1b = _banded_conv_weights(w1, W, W, col_offset=1)            # (3, K1, WCout)
    w1bp = jnp.zeros((3, K1p, WCout), jnp.float32).at[:, :K1, :].set(w1b)
    w1s = w1bp.reshape(3 * K1p, WCout)                            # K-stacked

    w2b = _banded_conv_weights(w2, W, W, col_offset=1)            # (3, WCout, WCout)
    w2s = w2b.reshape(3 * WCout, WCout)                           # K-stacked

    b1p = jnp.tile(b1.astype(jnp.float32), W)[None, :]            # (1, WCout)
    b2p = jnp.tile(b2.astype(jnp.float32), W)[None, :]            # (1, WCout)
    selc = _pool_selection_matrix(W, Cout)                        # (WCout, WCout)

    return dict(w1s=w1s, b1p=b1p, w2s=w2s, b2p=b2p, selc=selc,
                Cin=Cin, Cout=Cout, K1p=K1p, W=W)


# ---------------------------------------------------------------------------
# Chip-aware batch blocking.
# ---------------------------------------------------------------------------
_SINGLE_TC_KINDS = ("v5e", "v5 lite", "v5lite", "v6e", "v6 lite", "v6lite")


def _default_batch_block(n):
    """Fold the whole batch into one grid step on single-TC chips; keep one
    image per grid step on 2-TC chips so ("parallel",) splits across cores."""
    try:
        kind = jax.devices()[0].device_kind.lower()
    except Exception:
        return 1
    if any(s in kind for s in _SINGLE_TC_KINDS):
        return n
    return 1


# ---------------------------------------------------------------------------
# Fused forward kernel.
# ---------------------------------------------------------------------------
def cnn_block_apply(x_nchw, params, *, batch_block=None):
    """Apply CNNBlock.forward (inference) using pre-built packed params."""
    N, Cin, H, W = x_nchw.shape
    assert H % 2 == 0 and W % 2 == 0, "H, W must be even for the 2x2 pool"
    assert params["Cin"] == Cin and params["W"] == W, "params built for other shape"
    Cout = params["Cout"]
    K1p = params["K1p"]
    WCin = W * Cin
    WCout = W * Cout
    H2, W2 = H // 2, W // 2
    Hp = H + 2
    OUTL = 2 * W2 * Cout                      # == WCout; 128-lane-dense store width

    nb = batch_block if batch_block is not None else _default_batch_block(N)
    if N % nb != 0:
        nb = 1
    grid = (N // nb,)

    # Layout prep only: lane-pack rows-on-sublanes, W*Cin on lanes.  No XLA pad;
    # the row halo + K lane-pad are built in VMEM inside the kernel.
    xpk = jnp.transpose(x_nchw, (0, 2, 3, 1)).astype(jnp.float32).reshape(N, H, WCin)

    def kernel(x_ref, w1_ref, b1_ref, w2_ref, b2_ref, sel_ref, o_ref,
               xh_ref, y1p_ref):
        # ---- build row-halo'd, lane-padded conv1 input in VMEM ----
        xh_ref[...] = jnp.zeros_like(xh_ref)
        xh_ref[:, 1:H + 1, 0:WCin] = x_ref[...]

        # ---- conv1 (3x3, pad=1) + bias + ReLU: ONE K-stacked MXU dot ----
        xs = jnp.concatenate(
            [xh_ref[:, 0:H, :], xh_ref[:, 1:H + 1, :], xh_ref[:, 2:H + 2, :]],
            axis=2).reshape(nb * H, 3 * K1p)
        y1 = jnp.maximum(
            jnp.dot(xs, w1_ref[...], preferred_element_type=jnp.float32)
            + b1_ref[...], 0.0)
        # TODO(synk): nn.Dropout2d is identity at inference; train-mode per-(N,C)
        # channel dropout with 1/(1-p) rescale is not implemented.

        # ---- keep conv1 output in VMEM with a 1-row zero halo for conv2 ----
        y1p_ref[:, 0:1, :] = jnp.zeros((nb, 1, WCout), jnp.float32)
        y1p_ref[:, H + 1:H + 2, :] = jnp.zeros((nb, 1, WCout), jnp.float32)
        y1p_ref[:, 1:H + 1, :] = y1.reshape(nb, H, WCout)

        # ---- conv2 (3x3, pad=1) + bias + ReLU: ONE K-stacked MXU dot ----
        ys = jnp.concatenate(
            [y1p_ref[:, 0:H, :], y1p_ref[:, 1:H + 1, :], y1p_ref[:, 2:H + 2, :]],
            axis=2).reshape(nb * H, 3 * WCout)
        y2 = jnp.maximum(
            jnp.dot(ys, w2_ref[...], preferred_element_type=jnp.float32)
            + b2_ref[...], 0.0)

        # ---- 2x2 max-pool, stride 2 ----
        # Row-pair max via a sublane reshape, then ONE fused even|odd selection
        # dot; the column pair-max uses an XLU roll (idle slot) so the HBM store
        # stays 128-lane dense (first W2*Cout lanes carry the result).
        rmax = jnp.max(y2.reshape(nb * H2, 2, WCout), axis=1)
        evod = jnp.dot(rmax, sel_ref[...], preferred_element_type=jnp.float32)
        pooled = jnp.maximum(evod, pltpu.roll(evod, shift=W2 * Cout, axis=1))
        o_ref[...] = pooled.reshape(nb, H2, OUTL).astype(o_ref.dtype)

    out_pk = pl.pallas_call(
        kernel,
        out_shape=jax.ShapeDtypeStruct((N, H2, OUTL), jnp.float32),
        grid_spec=pltpu.PrefetchScalarGridSpec(
            num_scalar_prefetch=0,
            grid=grid,
            in_specs=[
                pl.BlockSpec((nb, H, WCin), lambda g: (g, 0, 0)),
                pl.BlockSpec((3 * K1p, WCout), lambda g: (0, 0)),
                pl.BlockSpec((1, WCout), lambda g: (0, 0)),
                pl.BlockSpec((3 * WCout, WCout), lambda g: (0, 0)),
                pl.BlockSpec((1, WCout), lambda g: (0, 0)),
                pl.BlockSpec((WCout, OUTL), lambda g: (0, 0)),
            ],
            out_specs=pl.BlockSpec((nb, H2, OUTL), lambda g: (g, 0, 0)),
            scratch_shapes=[
                pltpu.VMEM((nb, Hp, K1p), jnp.float32),     # halo'd conv1 input
                pltpu.VMEM((nb, Hp, WCout), jnp.float32),   # halo'd conv1 output
            ],
        ),
        compiler_params=pltpu.CompilerParams(
            dimension_semantics=("parallel",)),
    )(xpk, params["w1s"], params["b1p"], params["w2s"], params["b2p"],
      params["selc"])

    out = out_pk[:, :, :W2 * Cout].reshape(N, H2, W2, Cout)
    return jnp.transpose(out, (0, 3, 1, 2))                       # back to NCHW


def cnn_block_forward(x_nchw, w1, b1, w2, b2):
    """Convenience wrapper (NOT the hot path): prepare params + apply."""
    _, _, H, W = x_nchw.shape
    params = prepare_cnn_block_params(w1, b1, w2, b2, H, W)
    return cnn_block_apply(x_nchw, params)


# ---------------------------------------------------------------------------
# Pure-JAX reference (for correctness check).
# ---------------------------------------------------------------------------
def reference_forward(x, w1, b1, w2, b2):
    dn = ('NCHW', 'OIHW', 'NCHW')
    y = jax.lax.conv_general_dilated(x, w1, (1, 1), ((1, 1), (1, 1)),
                                     dimension_numbers=dn)
    y = jnp.maximum(y + b1[None, :, None, None], 0.0)
    y = jax.lax.conv_general_dilated(y, w2, (1, 1), ((1, 1), (1, 1)),
                                     dimension_numbers=dn)
    y = jnp.maximum(y + b2[None, :, None, None], 0.0)
    y = jax.lax.reduce_window(y, -jnp.inf, jax.lax.max,
                              (1, 1, 2, 2), (1, 1, 2, 2), 'VALID')
    return y


if __name__ == "__main__":
    key = jax.random.PRNGKey(0)
    k0, k1, k2, k3, k4 = jax.random.split(key, 5)
    N, Cin, Cout, H, W = 2, 4, 8, 16, 16
    x = jax.random.normal(k0, (N, Cin, H, W), jnp.float32)
    w1 = jax.random.normal(k1, (Cout, Cin, 3, 3), jnp.float32) * 0.1
    b1 = jax.random.normal(k2, (Cout,), jnp.float32) * 0.1
    w2 = jax.random.normal(k3, (Cout, Cout, 3, 3), jnp.float32) * 0.1
    b2 = jax.random.normal(k4, (Cout,), jnp.float32) * 0.1

    # Packed weights are built ONCE at parameter-init time (hoisted out of the
    # per-call forward path per perf review).
    params = prepare_cnn_block_params(w1, b1, w2, b2, H, W)

    out = jax.block_until_ready(cnn_block_apply(x, params))
    assert out.shape == (N, Cout, H // 2, W // 2), out.shape

    ref = jax.block_until_ready(reference_forward(x, w1, b1, w2, b2))
    err = float(jnp.max(jnp.abs(out - ref)))
    if not bool(jnp.allclose(out, ref, atol=1e-3, rtol=1e-3)):
        raise AssertionError(f"mismatch vs reference, max abs err={err}")
    print("KERNEL_OK")
</pallas_src>

<mosaic_0001>
module attributes {stable_mosaic.version = 11 : i64} {
  func.func @kernel(%arg0: i32, %arg1: memref<1x16x64xf32, #tpu.memory_space<vmem>>, %arg2: memref<384x128xf32, #tpu.memory_space<vmem>>, %arg3: memref<1x128xf32, #tpu.memory_space<vmem>>, %arg4: memref<384x128xf32, #tpu.memory_space<vmem>>, %arg5: memref<1x128xf32, #tpu.memory_space<vmem>>, %arg6: memref<128x128xf32, #tpu.memory_space<vmem>>, %arg7: memref<1x8x128xf32, #tpu.memory_space<vmem>>, %arg8: memref<1x18x128xf32, #tpu.memory_space<vmem>>, %arg9: memref<1x18x128xf32, #tpu.memory_space<vmem>>) attributes {dimension_semantics = [#tpu.dimension_semantics<parallel>], iteration_bounds = array<i64: 2>, scalar_prefetch = 0 : i64, scratch_operands = 2 : i64, tpu.core_type = #tpu.core_type<tc>, window_params = [{transform_indices = @transform_0, window_bounds = array<i64: 1, 16, 64>}, {pipeline_mode = #tpu.pipeline_mode<synchronous>, transform_indices = @transform_1, window_bounds = array<i64: 384, 128>}, {pipeline_mode = #tpu.pipeline_mode<synchronous>, transform_indices = @transform_2, window_bounds = array<i64: 1, 128>}, {pipeline_mode = #tpu.pipeline_mode<synchronous>, transform_indices = @transform_3, window_bounds = array<i64: 384, 128>}, {pipeline_mode = #tpu.pipeline_mode<synchronous>, transform_indices = @transform_4, window_bounds = array<i64: 1, 128>}, {pipeline_mode = #tpu.pipeline_mode<synchronous>, transform_indices = @transform_5, window_bounds = array<i64: 128, 128>}, {transform_indices = @transform_6, window_bounds = array<i64: 1, 8, 128>}]} {
    %cst = arith.constant 0.000000e+00 : f32
    %0 = vector.broadcast %cst : f32 to vector<1x18x128xf32>
    %c0 = arith.constant 0 : index
    %c0_0 = arith.constant 0 : index
    %c0_1 = arith.constant 0 : index
    %1 = vector.load %arg8[%c0, %c0_0, %c0_1] : memref<1x18x128xf32, #tpu.memory_space<vmem>>, vector<1x18x128xf32>
    tpu.vector_store %arg8[%c0, %c0_0, %c0_1], %0 {strides = array<i32>} : memref<1x18x128xf32, #tpu.memory_space<vmem>>, vector<1x18x128xf32>,
    %c0_2 = arith.constant 0 : index
    %c0_3 = arith.constant 0 : index
    %c0_4 = arith.constant 0 : index
    %2 = vector.load %arg1[%c0_2, %c0_3, %c0_4] : memref<1x16x64xf32, #tpu.memory_space<vmem>>, vector<1x16x64xf32>
    %c0_5 = arith.constant 0 : index
    %c1 = arith.constant 1 : index
    %c0_6 = arith.constant 0 : index
    %3 = vector.load %arg8[%c0_5, %c1, %c0_6] : memref<1x18x128xf32, #tpu.memory_space<vmem>>, vector<1x16x64xf32>
    tpu.vector_store %arg8[%c0_5, %c1, %c0_6], %2 {strides = array<i32>} : memref<1x18x128xf32, #tpu.memory_space<vmem>>, vector<1x16x64xf32>,
    %c0_7 = arith.constant 0 : index
    %c0_8 = arith.constant 0 : index
    %c0_9 = arith.constant 0 : index
    %4 = vector.load %arg8[%c0_7, %c0_8, %c0_9] : memref<1x18x128xf32, #tpu.memory_space<vmem>>, vector<1x16x128xf32>
    %c0_10 = arith.constant 0 : index
    %c1_11 = arith.constant 1 : index
    %c0_12 = arith.constant 0 : index
    %5 = vector.load %arg8[%c0_10, %c1_11, %c0_12] : memref<1x18x128xf32, #tpu.memory_space<vmem>>, vector<1x16x128xf32>
    %c0_13 = arith.constant 0 : index
    %c2 = arith.constant 2 : index
    %c0_14 = arith.constant 0 : index
    %6 = vector.load %arg8[%c0_13, %c2, %c0_14] : memref<1x18x128xf32, #tpu.memory_space<vmem>>, vector<1x16x128xf32>
    %7 = tpu.concatenate %4, %5, %6 in 2 : vector<1x16x128xf32>, vector<1x16x128xf32>, vector<1x16x128xf32> -> vector<1x16x384xf32>
    %8 = vector.shape_cast %7 : vector<1x16x384xf32> to vector<16x384xf32>
    %c0_15 = arith.constant 0 : index
    %c0_16 = arith.constant 0 : index
    %9 = vector.load %arg2[%c0_15, %c0_16] : memref<384x128xf32, #tpu.memory_space<vmem>>, vector<384x128xf32>
    %cst_17 = arith.constant dense<0.000000e+00> : vector<16x128xf32>
    %10 = tpu.matmul %8, %9, %cst_17 {dimension_numbers = #tpu.dot_dimension_numbers<[1], [0], [0], [1], [0, 0, 1, 1], [], []>} : vector<16x384xf32>, vector<384x128xf32>, vector<16x128xf32> -> vector<16x128xf32>
    %c0_18 = arith.constant 0 : index
    %c0_19 = arith.constant 0 : index
    %11 = vector.load %arg3[%c0_18, %c0_19] : memref<1x128xf32, #tpu.memory_space<vmem>>, vector<1x128xf32>
    %12 = vector.broadcast %11 : vector<1x128xf32> to vector<16x128xf32>
    %13 = arith.addf %10, %12 : vector<16x128xf32>
    %cst_20 = arith.constant 0.000000e+00 : f32
    %14 = vector.broadcast %cst_20 : f32 to vector<16x128xf32>
    %15 = arith.maximumf %13, %14 : vector<16x128xf32>
    %cst_21 = arith.constant 0.000000e+00 : f32
    %16 = vector.broadcast %cst_21 : f32 to vector<1x1x128xf32>
    %c0_22 = arith.constant 0 : index
    %c0_23 = arith.constant 0 : index
    %c0_24 = arith.constant 0 : index
    %17 = vector.load %arg9[%c0_22, %c0_23, %c0_24] : memref<1x18x128xf32, #tpu.memory_space<vmem>>, vector<1x1x128xf32>
    tpu.vector_store %arg9[%c0_22, %c0_23, %c0_24], %16 {strides = array<i32>} : memref<1x18x128xf32, #tpu.memory_space<vmem>>, vector<1x1x128xf32>,
    %cst_25 = arith.constant 0.000000e+00 : f32
    %18 = vector.broadcast %cst_25 : f32 to vector<1x1x128xf32>
    %c0_26 = arith.constant 0 : index
    %c17 = arith.constant 17 : index
    %c0_27 = arith.constant 0 : index
    %19 = vector.load %arg9[%c0_26, %c17, %c0_27] : memref<1x18x128xf32, #tpu.memory_space<vmem>>, vector<1x1x128xf32>
    tpu.vector_store %arg9[%c0_26, %c17, %c0_27], %18 {strides = array<i32>} : memref<1x18x128xf32, #tpu.memory_space<vmem>>, vector<1x1x128xf32>,
    %20 = vector.shape_cast %15 : vector<16x128xf32> to vector<1x16x128xf32>
    %c0_28 = arith.constant 0 : index
    %c1_29 = arith.constant 1 : index
    %c0_30 = arith.constant 0 : index
    %21 = vector.load %arg9[%c0_28, %c1_29, %c0_30] : memref<1x18x128xf32, #tpu.memory_space<vmem>>, vector<1x16x128xf32>
    tpu.vector_store %arg9[%c0_28, %c1_29, %c0_30], %20 {strides = array<i32>} : memref<1x18x128xf32, #tpu.memory_space<vmem>>, vector<1x16x128xf32>,
    %c0_31 = arith.constant 0 : index
    %c0_32 = arith.constant 0 : index
    %c0_33 = arith.constant 0 : index
    %22 = vector.load %arg9[%c0_31, %c0_32, %c0_33] : memref<1x18x128xf32, #tpu.memory_space<vmem>>, vector<1x16x128xf32>
    %c0_34 = arith.constant 0 : index
    %c1_35 = arith.constant 1 : index
    %c0_36 = arith.constant 0 : index
    %23 = vector.load %arg9[%c0_34, %c1_35, %c0_36] : memref<1x18x128xf32, #tpu.memory_space<vmem>>, vector<1x16x128xf32>
    %c0_37 = arith.constant 0 : index
    %c2_38 = arith.constant 2 : index
    %c0_39 = arith.constant 0 : index
    %24 = vector.load %arg9[%c0_37, %c2_38, %c0_39] : memref<1x18x128xf32, #tpu.memory_space<vmem>>, vector<1x16x128xf32>
    %25 = tpu.concatenate %22, %23, %24 in 2 : vector<1x16x128xf32>, vector<1x16x128xf32>, vector<1x16x128xf32> -> vector<1x16x384xf32>
    %26 = vector.shape_cast %25 : vector<1x16x384xf32> to vector<16x384xf32>
    %c0_40 = arith.constant 0 : index
    %c0_41 = arith.constant 0 : index
    %27 = vector.load %arg4[%c0_40, %c0_41] : memref<384x128xf32, #tpu.memory_space<vmem>>, vector<384x128xf32>
    %cst_42 = arith.constant dense<0.000000e+00> : vector<16x128xf32>
    %28 = tpu.matmul %26, %27, %cst_42 {dimension_numbers = #tpu.dot_dimension_numbers<[1], [0], [0], [1], [0, 0, 1, 1], [], []>} : vector<16x384xf32>, vector<384x128xf32>, vector<16x128xf32> -> vector<16x128xf32>
    %c0_43 = arith.constant 0 : index
    %c0_44 = arith.constant 0 : index
    %29 = vector.load %arg5[%c0_43, %c0_44] : memref<1x128xf32, #tpu.memory_space<vmem>>, vector<1x128xf32>
    %30 = vector.broadcast %29 : vector<1x128xf32> to vector<16x128xf32>
    %31 = arith.addf %28, %30 : vector<16x128xf32>
    %cst_45 = arith.constant 0.000000e+00 : f32
    %32 = vector.broadcast %cst_45 : f32 to vector<16x128xf32>
    %33 = arith.maximumf %31, %32 : vector<16x128xf32>
    %34 = vector.shape_cast %33 : vector<16x128xf32> to vector<8x2x128xf32>
    %cst_46 = arith.constant dense<0xFF800000> : vector<8x128xf32>
    %35 = vector.multi_reduction <maximumf>, %34, %cst_46 [1] : vector<8x2x128xf32> to vector<8x128xf32>
    %c0_47 = arith.constant 0 : index
    %c0_48 = arith.constant 0 : index
    %36 = vector.load %arg6[%c0_47, %c0_48] : memref<128x128xf32, #tpu.memory_space<vmem>>, vector<128x128xf32>
    %cst_49 = arith.constant dense<0.000000e+00> : vector<8x128xf32>
    %37 = tpu.matmul %35, %36, %cst_49 {dimension_numbers = #tpu.dot_dimension_numbers<[1], [0], [0], [1], [0, 0, 1, 1], [], []>} : vector<8x128xf32>, vector<128x128xf32>, vector<8x128xf32> -> vector<8x128xf32>
    %c64_i32 = arith.constant 64 : i32
    %38 = tpu.dynamic_rotate %37 by %c64_i32 dim 1 : vector<8x128xf32>, i32 -> vector<8x128xf32>
    %39 = arith.maximumf %37, %38 : vector<8x128xf32>
    %40 = vector.shape_cast %39 : vector<8x128xf32> to vector<1x8x128xf32>
    %c0_50 = arith.constant 0 : index
    %c0_51 = arith.constant 0 : index
    %c0_52 = arith.constant 0 : index
    %41 = vector.load %arg7[%c0_50, %c0_51, %c0_52] : memref<1x8x128xf32, #tpu.memory_space<vmem>>, vector<1x8x128xf32>
    tpu.vector_store %arg7[%c0_50, %c0_51, %c0_52], %40 {strides = array<i32>} : memref<1x8x128xf32, #tpu.memory_space<vmem>>, vector<1x8x128xf32>,
    return
  }
  func.func @transform_0(%arg0: i32) -> (i32, i32, i32) {
    %c0_i32 = arith.constant 0 : i32
    %c0_i32_0 = arith.constant 0 : i32
    %c0_i32_1 = arith.constant 0 : i32
    return %arg0, %c0_i32, %c0_i32_0 : i32, i32, i32
  }
  func.func @transform_1(%arg0: i32) -> (i32, i32) {
    %c0_i32 = arith.constant 0 : i32
    %c0_i32_0 = arith.constant 0 : i32
    %c0_i32_1 = arith.constant 0 : i32
    return %c0_i32, %c0_i32_0 : i32, i32
  }
  func.func @transform_2(%arg0: i32) -> (i32, i32) {
    %c0_i32 = arith.constant 0 : i32
    %c0_i32_0 = arith.constant 0 : i32
    %c0_i32_1 = arith.constant 0 : i32
    return %c0_i32, %c0_i32_0 : i32, i32
  }
  func.func @transform_3(%arg0: i32) -> (i32, i32) {
    %c0_i32 = arith.constant 0 : i32
    %c0_i32_0 = arith.constant 0 : i32
    %c0_i32_1 = arith.constant 0 : i32
    return %c0_i32, %c0_i32_0 : i32, i32
  }
  func.func @transform_4(%arg0: i32) -> (i32, i32) {
    %c0_i32 = arith.constant 0 : i32
    %c0_i32_0 = arith.constant 0 : i32
    %c0_i32_1 = arith.constant 0 : i32
    return %c0_i32, %c0_i32_0 : i32, i32
  }
  func.func @transform_5(%arg0: i32) -> (i32, i32) {
    %c0_i32 = arith.constant 0 : i32
    %c0_i32_0 = arith.constant 0 : i32
    %c0_i32_1 = arith.constant 0 : i32
    return %c0_i32, %c0_i32_0 : i32, i32
  }
  func.func @transform_6(%arg0: i32) -> (i32, i32, i32) {
    %c0_i32 = arith.constant 0 : i32
    %c0_i32_0 = arith.constant 0 : i32
    %c0_i32_1 = arith.constant 0 : i32
    return %arg0, %c0_i32, %c0_i32_0 : i32, i32, i32
  }
}

</mosaic_0001>

<bundles_post_ra>
// kernel: tpu_custom_call.1
= control target key start
LH: loop header
LB: loop body
LE: loop exit
PB: predicated region body
PF: predicated region fallthrough
CT: control target
= control target key end

     0   :  { %11 = vsyncpa [#allocation5], 0  ;;  %s2104_s0 = inlined_call_operand.hbm [shape: f32[2,16,64], index: 0, kind: input, shape index: {}]   ;;  %s2105_s1 = inlined_call_operand.hbm [shape: f32[384,128], index: 1, kind: input, shape index: {}]   ;;  %s2106_s2 = inlined_call_operand.vmem [shape: f32[1,128], index: 2, kind: input, shape index: {}]   ;;  %s2107_s3 = inlined_call_operand.hbm [shape: f32[384,128], index: 3, kind: input, shape index: {}]   ;;  %s2108_s4 = inlined_call_operand.vmem [shape: f32[1,128], index: 4, kind: input, shape index: {}]   ;;  %s2109_s5 = inlined_call_operand.hbm [shape: f32[128,128], index: 5, kind: input, shape index: {}]   ;;  %s2110_s6 = inlined_call_operand.hbm [shape: f32[2,8,128], index: 6, kind: output, shape index: {}]  }
   0x1   :  { %13 = vsyncpa [#allocation5 + $0x1], 0 }
   0x2   :  { %14 = vsyncpa [#allocation8], 0 }
   0x3   :  { %15 = vsyncpa [#allocation11], 0 }
   0x4   :  { %16 = vsyncpa [#allocation6], 0 }
   0x5   :  { %18 = vsyncpa [#allocation6 + $0x1], 0  ;;  %s1808_s21 = smov 0   ;;  %s1810_s22 = smov 0  }
   0x6   :  { %s1812_s23 = smov 0   ;;  %s1814_s24 = smov 0  }
   0x7 LB: > { %s1829_s25 = sadd.s32 4294967295, %s1759_s24   ;;  %s1079_s26 = sadd.s32 4294967294, %s1759_s24   ;;  %s1759_s24 = sphi %s1814_s24, %s2133_s24   ;;  %s1755_s23 = sphi %s1812_s23, %s2132_s23   ;;  %s1751_s22 = sphi %s1810_s22, %s2131_s22   ;;  %s1747_s21 = sphi %s1808_s21, %s2130_s21  }
   0x8   : > { %p44_p0 = scmp.ne.s32.totalorder %s1751_s22, %s1747_s21  ;;  %p2111_p1 = scmp.eq.s32.totalorder %s1829_s25, 0 }
   0x9   : > { %p179_p3 = scmp.eq.s32.totalorder %s1079_s26, 1  ;;  %p1080_p5 = scmp.ge.s32.totalorder %s1759_s24, 1 }
   0xa   : > { %p1838_p4 = por %p2111_p1, %p44_p0  ;;  %p186_p7 = scmp.lt.s32.totalorder %s1759_s24, 3 }
   0xb   : > { %p1843_p6 = por %p179_p3, %p44_p0  ;;  %s1761_s30 = smov [#allocation7]  }
   0xc   : > { %s2114_s27 = scalar_select %p1838_p4, 1, 0 }
   0xd   : > { %s2115_s28 = scalar_select %p1843_p6, 1, 0 }
   0xe   : > { %p1848_p8 = pnand %p1080_p5, %p186_p7  ;;  %s198_s7 = sshll.u32 %s1761_s30, 4  ;;  %s1852_s7 = int_to_ptr.vmem [resolvable:$true] %s198_s7 }
   0xf   : > { %s1762_s9 = smov [#allocation9]   ;;  %s1763_s11 = smov [#allocation10]  }
  0x10   : > { %s2116_s29 = scalar_select %p1848_p8, 1, 0 }
  0x11   : > { %p1503_p9 = pneg %p1848_p8  ;;  %s214_s10 = sshll.u32 %s1762_s9, 4  ;;  %s1863_s10 = int_to_ptr.vmem [resolvable:$true] %s214_s10 }
  0x12   : > { %s1865_s12 = sshll.u32 %s1763_s11, 4  ;;  %s1571_s15 = scalar_lea.hbm %s2105_s1, 6144  ;;  %s231_s12 = int_to_ptr.vmem [resolvable:$true] %s1865_s12 }
  0x13   : > { %p1859_p11 = pnand %p1503_p9, %p2111_p1  ;;  %p1572_p12 = scmp.ne.s32.totalorder %s2105_s1, %s1571_s15 }
  0x14   : > { %p1578_p5 = scmp.lt.u32.totalorder %s1571_s15, %s2105_s1 }
  0x15   : > { %p1875_p13 = pneg %p1859_p11 }
  0x17   : > { %p1574_p0 = pnand %p1875_p13, %p1572_p12 }
  0x19   : > { %p1575_p3 = pneg %p1574_p0 }
  0x1b   : > { %p1580_p7 = pnand %p1578_p5, %p1575_p3 }
  0x1d   : > { %1583 = shalt.err (!%p1580_p7)
}
  0x1e   : > { %s1584_s26 = scalar_lea.vmem %s1852_s7, 6144  ;;  %p1592_p2 = scmp.lt.s32.totalorder %s1852_s7, %s1852_s7 }
  0x1f   : > { %p1585_p9 = scmp.ne.s32.totalorder %s1852_s7, %s1584_s26  ;;  %p1593_p6 = scmp.lt.s32.totalorder %s1584_s26, %s1584_s26 }
  0x21   : > { %p1587_p10 = pnand %p1585_p9, %p1875_p13  ;;  %p1594_p12 = por %p1593_p6, %p1592_p2 }
  0x23   : > { %p1588_p1 = pneg %p1587_p10 }
  0x25   : > { %p1595_p0 = pnand %p1594_p12, %p1588_p1 }
  0x27   : > { %1598 = shalt.err (!%p1595_p0)
}
  0x28   : > { %s1764_s30 = smov 128   ;;  %s1765_s9 = smov 8  }
  0x29   : > { %1506 = dma.hbm_to_vmem [thread:$0]  (!%p1859_p11), %s2105_s1, 6144, %s1852_s7, [#allocation8], %s1764_s30, %s1764_s30, %s1765_s9  }
  0x2a   : > { %s1599_s16 = scalar_lea.hbm %s2107_s3, 6144 }
  0x2b   : > { %p1600_p1 = scmp.ne.s32.totalorder %s2107_s3, %s1599_s16  ;;  %p1606_p10 = scmp.lt.u32.totalorder %s1599_s16, %s2107_s3 }
  0x2d   : > { %p1602_p2 = pnand %p1600_p1, %p1875_p13 }
  0x2f   : > { %p1603_p6 = pneg %p1602_p2 }
  0x31   : > { %p1608_p3 = pnand %p1606_p10, %p1603_p6 }
  0x33   : > { %1611 = shalt.err (!%p1608_p3)
}
  0x34   : > { %s1612_s7 = scalar_lea.vmem %s1863_s10, 6144  ;;  %p1620_p12 = scmp.lt.s32.totalorder %s1863_s10, %s1863_s10 }
  0x35   : > { %p1613_p5 = scmp.ne.s32.totalorder %s1863_s10, %s1612_s7  ;;  %p1621_p0 = scmp.lt.s32.totalorder %s1612_s7, %s1612_s7 }
  0x37   : > { %p1615_p7 = pnand %p1613_p5, %p1875_p13  ;;  %p1622_p1 = por %p1621_p0, %p1620_p12 }
  0x39   : > { %p1616_p9 = pneg %p1615_p7 }
  0x3b   : > { %p1623_p2 = pnand %p1622_p1, %p1616_p9 }
  0x3d   : > { %1626 = shalt.err (!%p1623_p2)
}
  0x3e   : > { %1509 = dma.hbm_to_vmem [thread:$0]  (!%p1859_p11), %s2107_s3, 6144, %s1863_s10, [#allocation8], %s1764_s30, %s1764_s30, %s1765_s9  }
  0x3f   : > { %s1627_s16 = scalar_lea.hbm %s2109_s5, 2048 }
  0x40   : > { %p1628_p6 = scmp.ne.s32.totalorder %s2109_s5, %s1627_s16  ;;  %p1634_p5 = scmp.lt.u32.totalorder %s1627_s16, %s2109_s5 }
  0x42   : > { %p1630_p10 = pnand %p1628_p6, %p1875_p13 }
  0x44   : > { %p1631_p3 = pneg %p1630_p10 }
  0x46   : > { %p1636_p7 = pnand %p1634_p5, %p1631_p3 }
  0x48   : > { %1639 = shalt.err (!%p1636_p7)
}
  0x49   : > { %s1640_s7 = scalar_lea.vmem %s231_s12, 2048  ;;  %p1648_p1 = scmp.lt.s32.totalorder %s231_s12, %s231_s12 }
  0x4a   : > { %p1641_p9 = scmp.ne.s32.totalorder %s231_s12, %s1640_s7  ;;  %p1649_p2 = scmp.lt.s32.totalorder %s1640_s7, %s1640_s7 }
  0x4c   : > { %p1643_p12 = pnand %p1641_p9, %p1875_p13  ;;  %p1650_p4 = por %p1649_p2, %p1648_p1 }
  0x4e   : > { %p1644_p0 = pneg %p1643_p12 }
  0x50   : > { %p1651_p8 = pnand %p1650_p4, %p1644_p0 }
  0x52   : > { %1654 = shalt.err (!%p1651_p8)
}
  0x53   : > { %1512 = dma.hbm_to_vmem [thread:$0]  (!%p1859_p11), %s2109_s5, 2048, %s231_s12, [#allocation11], %s1764_s30, %s1764_s30, %s1765_s9  }
  0x54   : > { %s1948_s18 = sadd.s32 1, %s1759_s24   ;;  %s31_s13 = sadd.s32 1, %s1755_s23 }
  0x55   : > { %s28_s8 = ssub.s32 %s1759_s24, %s1948_s18  ;;  %p38_p8 = scmp.ne.s32.totalorder %s1755_s23, %s1751_s22 }
  0x56   : > { %p29_p4 = scmp.eq.s32.totalorder %s28_s8, 0  ;;  %p39_p13 = scmp.eq.s32.totalorder %s1759_s24, 0 }
  0x57   : > { %p1524_p6 = scmp.lt.s32.totalorder %s1759_s24, 2  ;;  %p2119_p3 = scmp.eq.s32.totalorder %s1829_s25, 1 }
  0x58   : > { %s1958_s14 = scalar_select %p29_p4, %s1755_s23, %s31_s13  }
  0x59   : > { %p40_p10 = por %p39_p13, %p38_p8  ;;  %p1962_p5 = por %p2119_p3, %p38_p8 }
  0x5a   : > { %s244_s16 = sand.u32 1, %s1755_s23   ;;  %s1100_s17 = sshll.u32 %s1759_s24, 8 }
  0x5b   : > { %s1085_s12 = sshll.u32 %s244_s16, 4  ;;  %s1971_s26 = scalar_lea.hbm %s2104_s0, %s1100_s17 }
  0x5c   : > { %s248_s7 = scalar_lea.vmem [#allocation4], %s1085_s12  ;;  %p1973_p11 = pnand %p1524_p6, %p40_p10 }
  0x5d   : > { %s255_s10 = sshll.u32 %s248_s7, 4  ;;  %s1979_s8 = scalar_lea.sflag [#allocation5], %s244_s16  ;;  %s1977_s10 = int_to_ptr.vmem [resolvable:$true] %s255_s10 }
  0x5e   : > { %s1655_s13 = scalar_lea.hbm %s1971_s26, 256  ;;  %p1657_p9 = pneg %p1973_p11 }
  0x5f   : > { %p1656_p7 = scmp.ne.s32.totalorder %s1971_s26, %s1655_s13  ;;  %s1660_s19 = scalar_lea.hbm %s2104_s0, 512 }
  0x60   : > { %p1661_p1 = scmp.lt.u32.totalorder %s1971_s26, %s2104_s0  ;;  %p1662_p2 = scmp.lt.u32.totalorder %s1660_s19, %s1655_s13 }
  0x61   : > { %p1658_p12 = pnand %p1657_p9, %p1656_p7  ;;  %p1664_p8 = scmp.lt.u32.totalorder %s1655_s13, %s1971_s26 }
  0x62   : > { %p1663_p4 = por %p1662_p2, %p1661_p1 }
  0x63   : > { %p1659_p0 = pneg %p1658_p12 }
  0x64   : > { %p1665_p13 = por %p1664_p8, %p1663_p4 }
  0x66   : > { %p1666_p6 = pnand %p1665_p13, %p1659_p0 }
  0x68   : > { %1669 = shalt.err (!%p1666_p6)
}
  0x69   : > { %s1670_s16 = scalar_lea.vmem %s1977_s10, 256  ;;  %s1766_s17 = smov [#allocation4]  }
  0x6a   : > { %p1671_p10 = scmp.ne.s32.totalorder %s1977_s10, %s1670_s16  ;;  %s1675_s12 = sshll.u32 %s1766_s17, 4  ;;  %s1676_s12 = int_to_ptr.vmem [resolvable:$false] %s1675_s12 }
  0x6b   : > { %s1677_s20 = scalar_lea.vmem %s1676_s12, 512  ;;  %p1678_p12 = scmp.lt.s32.totalorder %s1977_s10, %s1676_s12 }
  0x6c   : > { %p1673_p3 = pnand %p1671_p10, %p1657_p9  ;;  %p1679_p1 = scmp.lt.s32.totalorder %s1677_s20, %s1670_s16 }
  0x6e   : > { %p1674_p7 = pneg %p1673_p3  ;;  %p1680_p2 = por %p1679_p1, %p1678_p12 }
  0x70   : > { %p1681_p4 = pnand %p1680_p2, %p1674_p7 }
  0x72   : > { %1684 = shalt.err (!%p1681_p4)
}
  0x73   : > { %1516 = dma.hbm_to_vmem [thread:$0]  (!%p1973_p11), %s1971_s26, 256, %s1977_s10, %s1979_s8, %s1764_s30, %s1764_s30, %s1765_s9  }
  0x74   : > { %p2122_p9 = scmp.ne.s32.totalorder %s2116_s29, 0 }
  0x75   : > { %s2013_s13 = sand.u32 (!%p2122_p9), 1, %s1751_s22   ;;  %p2123_p0 = scmp.ne.s32.totalorder (!%p2122_p9), %s2114_s27, 0 }
  0x76   : > { %267 = sbr.rel (%p2122_p9) target bundleno = 989 (0x3dd), region = 44  ;;  %s1089_s19 = sshll.u32 (!%p2122_p9), %s2013_s13, 4 }
  0x77   : > { %s270_s7 = scalar_lea.sflag (!%p2122_p9), [#allocation5], %s2013_s13  ;;  %s2017_s16 = scalar_lea.vmem (!%p2122_p9), [#allocation4], %s1089_s19 }
  0x7d   : > { %1730 = dma.done.wait (%p2123_p0), %s270_s7, 256  }
  0x7e   : > { %1732 = vsyncadd (%p2123_p0), %s270_s7, 4294967040  ;;  %p2124_p11 = scmp.eq.s32.totalorder %s1829_s25, 0 }
  0x80   : > { %1734 = dma.done.wait (%p2124_p11), [#allocation8], 12288   ;;  %p2125_p8 = pmov %p2124_p11 }
  0x82   : > { %1736 = vsyncadd (%p2125_p8), [#allocation8], 4294955008  ;;  %p2126_p13 = pmov %p2125_p8 }
  0x83   : > { %p2127_p6 = pmov %p2125_p8 }
  0x84   : > { %1738 = dma.done.wait (%p2126_p13), [#allocation11], 2048  }
  0x85   : > { %1740 = vsyncadd (%p2127_p6), [#allocation11], 4294965248  ;;  %v1767_v0 = vmov 0.0   ;;  %v344_v1 = vld [vmem:[#allocation7 + $0x80] sm:$0xff]  ;;  %v345_v2 = vld [vmem:[#allocation7 + $0x88] sm:$0xff]  ;;  %vm319_vm0 = vcmask 523264  }
  0x86   : > { %314 = vst [vmem:[#allocation2] sm:$0xff] %v1767_v0  ;;  %315 = vst [vmem:[#allocation2 + $0x8] sm:$0xff] %v1767_v0  ;;  %v328_v3 = vld [vmem:[#allocation7] sm:$0xff]  ;;  %v1335_v4 = vpack.c.bf16 %v345_v2, %v344_v1  ;;  %v329_v5 = vld [vmem:[#allocation7 + $0x8] sm:$0xff]  ;;  %vm1769_vm1 = vmmov 0   ;;  %vm796_vm2 = vcmask 1041408  }
  0x87   : > { %316 = vst [vmem:[#allocation2 + $0x10] sm:$0x3] %v1767_v0  ;;  %535 = vst [vmem:[#allocation3] sm:$0x1] %v1767_v0  ;;  %v360_v6 = vld [vmem:[#allocation7 + $0x100] sm:$0xff]  ;;  %v361_v7 = vld [vmem:[#allocation7 + $0x108] sm:$0xff]  ;;  %v1337_v8 = vpack.c.bf16 %v329_v5, %v328_v3 }
  0x88   : > { %536 = vst [vmem:[#allocation3 + $0x11] sm:$0x1] %v1767_v0  ;;  %v1367_v9 = vpack.c.bf16 %v361_v7, %v360_v6  ;;  %v346_v10 = vld [vmem:[#allocation7 + $0x90] sm:$0xff]  ;;  %v347_v11 = vld [vmem:[#allocation7 + $0x98] sm:$0xff]  ;;  %1336 = vmatprep.subr.bf16.mxu0 %v1335_v4  ;;  %v348_v19 = vld [vmem:[#allocation7 + $0xa0] sm:$0xff]  ;;  %vm877_vm3 = vcmask 1041409  }
  0x89   : > { %v330_v12 = vld [vmem:[#allocation7 + $0x10] sm:$0xff]  ;;  %v1339_v13 = vpack.c.bf16 %v347_v11, %v346_v10  ;;  %v331_v14 = vld [vmem:[#allocation7 + $0x18] sm:$0xff]  ;;  %1338 = vmatpush3.bf16.msra.mxu0 %v1337_v8  ;;  %v349_v20 = vld [vmem:[#allocation7 + $0xa8] sm:$0xff]  ;;  %vm879_vm4 = vcmask 1042434   ;;  %vm881_vm5 = vcmask 1043459   ;;  %vm883_vm6 = vcmask 1044484  }
  0x8a   : > { %v362_v15 = vld [vmem:[#allocation7 + $0x110] sm:$0xff]  ;;  %v363_v16 = vld [vmem:[#allocation7 + $0x118] sm:$0xff]  ;;  %1368 = vmatprep.subr.bf16.mxu1 %v1367_v9  ;;  %v1341_v17 = vpack.c.bf16 %v331_v14, %v330_v12  ;;  %v332_v21 = vld [vmem:[#allocation7 + $0x20] sm:$0xff]  ;;  %v1343_v22 = vpack.c.bf16 %v349_v20, %v348_v19  ;;  %vm885_vm7 = vcmask 1045509   ;;  %vm887_vm8 = vcmask 1046534   ;;  %s1771_s26 = smov 64  }
  0x8b   : > { %v1371_v18 = vpack.c.bf16 %v363_v16, %v362_v15  ;;  %1340 = vmatprep.subr.bf16.mxu0 %v1339_v13  ;;  %1370 = vmatpush3.bf16.msra.mxu1 %v1367_v9  ;;  %v333_v23 = vld [vmem:[#allocation7 + $0x28] sm:$0xff]  ;;  %v364_v24 = vld [vmem:[#allocation7 + $0x120] sm:$0xff]  ;;  %v350_v27 = vld [vmem:[#allocation7 + $0xb0] sm:$0xff]  ;;  %vm889_vm9 = vcmask 1047559   ;;  %s1093_s10 = sshll.u32 %s2013_s13, 3  ;;  %s1097_s11 = sshll.u32 %s1829_s25, 7 }
  0x8c   : > { %v365_v25 = vld [vmem:[#allocation7 + $0x128] sm:$0xff]  ;;  %v351_v28 = vld [vmem:[#allocation7 + $0xb8] sm:$0xff]  ;;  %v366_v29 = vld [vmem:[#allocation7 + $0x130] sm:$0xff]  ;;  %v1345_v31 = vpack.c.bf16 %v333_v23, %v332_v21  ;;  %s313_s8 = scalar_lea.vmem [#allocation12], %s1093_s10  ;;  %s2060_s19 = scalar_lea.hbm %s2110_s6, %s1097_s11 }
  0x8d   : > { %1372 = vmatprep.subr.bf16.mxu1 %v1371_v18  ;;  %v1375_v26 = vpack.c.bf16 %v365_v25, %v364_v24  ;;  %v367_v30 = vld [vmem:[#allocation7 + $0x138] sm:$0xff]  ;;  %1342 = vmatpush3.bf16.msra.mxu0 %v1341_v17  ;;  %v1347_v32 = vpack.c.bf16 %v351_v28, %v350_v27  ;;  %v334_v33 = vld [vmem:[#allocation7 + $0x30] sm:$0xff]  ;;  %v352_v36 = vld [vmem:[#allocation7 + $0xc0] sm:$0xff]  ;;  %s980_s17 = sshll.u32 %s313_s8, 4  ;;  %s967_s7 = scalar_lea.sflag [#allocation6], %s2013_s13  ;;  %s2062_s17 = int_to_ptr.vmem [resolvable:$true] %s980_s17 }
  0x8e   : > { %1344 = vmatprep.subr.bf16.mxu0 %v1343_v22  ;;  %v335_v34 = vld [vmem:[#allocation7 + $0x38] sm:$0xff]  ;;  %v1379_v35 = vpack.c.bf16 %v367_v30, %v366_v29  ;;  %v353_v37 = vld [vmem:[#allocation7 + $0xc8] sm:$0xff]  ;;  %v368_v38 = vld [vmem:[#allocation7 + $0x140] sm:$0xff]  ;;  %s1772_s25 = smov [#allocation12]  }
  0x8f   : > { %1374 = vmatpush3.bf16.msra.mxu1 %v1371_v18  ;;  %v369_v39 = vld [vmem:[#allocation7 + $0x148] sm:$0xff]  ;;  %v1349_v40 = vpack.c.bf16 %v335_v34, %v334_v33  ;;  %v1351_v41 = vpack.c.bf16 %v353_v37, %v352_v36  ;;  %v336_v42 = vld [vmem:[#allocation7 + $0x40] sm:$0xff]  ;;  %v354_v45 = vld [vmem:[#allocation7 + $0xd0] sm:$0xff]  ;;  %s1689_s27 = sshll.u32 %s1772_s25, 4  ;;  %s1690_s27 = int_to_ptr.vmem [resolvable:$false] %s1689_s27 }
  0x90   : > { %1376 = vmatprep.subr.bf16.mxu1 %v1375_v26  ;;  %v337_v43 = vld [vmem:[#allocation7 + $0x48] sm:$0xff]  ;;  %v1383_v44 = vpack.c.bf16 %v369_v39, %v368_v38  ;;  %v355_v46 = vld [vmem:[#allocation7 + $0xd8] sm:$0xff]  ;;  %v370_v47 = vld [vmem:[#allocation7 + $0x150] sm:$0xff]  ;;  %s1691_s29 = scalar_lea.vmem %s1690_s27, 256  ;;  %p1692_p12 = scmp.lt.s32.totalorder %s2062_s17, %s1690_s27 }
  0x91   : > { %1346 = vmatpush3.bf16.msra.mxu0 %v1345_v31  ;;  %v371_v48 = vld [vmem:[#allocation7 + $0x158] sm:$0xff]  ;;  %v317_v49 = vld [vmem:[%s2017_s16] sm:$0xff]  ;;  %v1353_v50 = vpack.c.bf16 %v337_v43, %v336_v42  ;;  %v1355_v52 = vpack.c.bf16 %v355_v46, %v354_v45  ;;  %v357_v57 = vld [vmem:[#allocation7 + $0xe8] sm:$0xff] }
  0x92   : > { %1348 = vmatprep.subr.bf16.mxu0 %v1347_v32  ;;  %320 = vst.msk [vmem:[#allocation2 + $0x1] sm:$0xff] %vm319_vm0, %v317_v49  ;;  %v318_v51 = vld [vmem:[%s2017_s16 + $0x8] sm:$0xff]  ;;  %v338_v53 = vld [vmem:[#allocation7 + $0x50] sm:$0xff]  ;;  %v1387_v55 = vpack.c.bf16 %v371_v48, %v370_v47  ;;  %v356_v56 = vld [vmem:[#allocation7 + $0xe0] sm:$0xff]  ;;  %s1685_s16 = scalar_lea.vmem %s2062_s17, 128 }
  0x93   : > { %1378 = vmatpush3.bf16.msra.mxu1 %v1375_v26  ;;  %v339_v54 = vld [vmem:[#allocation7 + $0x58] sm:$0xff]  ;;  %321 = vst.msk [vmem:[#allocation2 + $0x9] sm:$0xff] %vm319_vm0, %v318_v51  ;;  %v372_v58 = vld [vmem:[#allocation7 + $0x160] sm:$0xff]  ;;  %v373_v59 = vld [vmem:[#allocation7 + $0x168] sm:$0xff]  ;;  %v1359_v61 = vpack.c.bf16 %v357_v57, %v356_v56  ;;  %p1686_p10 = scmp.ne.s32.totalorder %s2062_s17, %s1685_s16  ;;  %p1693_p1 = scmp.lt.s32.totalorder %s1691_s29, %s1685_s16 }
  0x94   : > { %1380 = vmatprep.subr.bf16.mxu1 %v1379_v35  ;;  %v1357_v60 = vpack.c.bf16 %v339_v54, %v338_v53  ;;  %v340_v62 = vld [vmem:[#allocation7 + $0x60] sm:$0xff]  ;;  %v341_v63 = vld [vmem:[#allocation7 + $0x68] sm:$0xff]  ;;  %v1391_v1 = vpack.c.bf16 %v373_v59, %v372_v58  ;;  %v358_v2 = vld [vmem:[#allocation7 + $0xf0] sm:$0xff] }
  0x95   : > { %1350 = vmatpush3.bf16.msra.mxu0 %v1349_v40  ;;  %v359_v3 = vld [vmem:[#allocation7 + $0xf8] sm:$0xff]  ;;  %v374_v5 = vld [vmem:[#allocation7 + $0x170] sm:$0xff]  ;;  %v1361_v7 = vpack.c.bf16 %v341_v63, %v340_v62  ;;  %v561_v13 = vld [vmem:[#allocation9 + $0x80] sm:$0xff]  ;;  %p1687_p3 = pnand %p1686_p10, %p1962_p5  ;;  %p1694_p2 = por %p1693_p1, %p1692_p12 }
  0x96   : > { %1352 = vmatprep.subr.bf16.mxu0 %v1351_v41  ;;  %v375_v6 = vld [vmem:[#allocation7 + $0x178] sm:$0xff]  ;;  %v1363_v9 = vpack.c.bf16 %v359_v3, %v358_v2  ;;  %v342_v10 = vld [vmem:[#allocation7 + $0x70] sm:$0xff]  ;;  %v562_v14 = vld [vmem:[#allocation9 + $0x88] sm:$0xff] }
  0x97   : > { %1382 = vmatpush3.bf16.msra.mxu1 %v1379_v35  ;;  %v343_v11 = vld [vmem:[#allocation7 + $0x78] sm:$0xff]  ;;  %v1395_v12 = vpack.c.bf16 %v375_v6, %v374_v5  ;;  %v577_v15 = vld [vmem:[#allocation9 + $0x100] sm:$0xff]  ;;  %v578_v16 = vld [vmem:[#allocation9 + $0x108] sm:$0xff]  ;;  %v1399_v18 = vpack.c.bf16 %v562_v14, %v561_v13  ;;  %p1688_p7 = pneg %p1687_p3 }
  0x98   : > { %1384 = vmatprep.subr.bf16.mxu1 %v1383_v44  ;;  %v1365_v17 = vpack.c.bf16 %v343_v11, %v342_v10  ;;  %v545_v19 = vld [vmem:[#allocation9] sm:$0xff]  ;;  %v546_v20 = vld [vmem:[#allocation9 + $0x8] sm:$0xff]  ;;  %v563_v21 = vld [vmem:[#allocation9 + $0x90] sm:$0xff]  ;;  %v1431_v22 = vpack.c.bf16 %v578_v16, %v577_v15 }
  0x99   : > { %1354 = vmatpush3.bf16.msra.mxu0 %v1353_v50  ;;  %v324_v4 = vld [vmem:[#allocation2 + $0x1] sm:$0xff]  ;;  %v1401_v29 = vpack.c.bf16 %v546_v20, %v545_v19  ;;  %v565_v33 = vld [vmem:[#allocation9 + $0xa0] sm:$0xff]  ;;  %v566_v35 = vld [vmem:[#allocation9 + $0xa8] sm:$0xff]  ;;  %p1695_p4 = pnand %p1694_p2, %p1688_p7 }
  0x9a   : > { %1356 = vmatprep.subr.bf16.mxu0 %v1355_v52  ;;  %447 = vmatprep.mubr.f32.mxu0 %v324_v4  ;;  %v326_v8 = vld [vmem:[#allocation2 + $0x2] sm:$0xff]  ;;  %v327_v28 = vld [vmem:[#allocation2 + $0xa] sm:$0xff]  ;;  %v582_v37 = vld [vmem:[#allocation9 + $0x128] sm:$0xff]  ;;  %v1407_v40 = vpack.c.bf16 %v566_v35, %v565_v33 }
  0x9b   : > { %1386 = vmatpush3.bf16.msra.mxu1 %v1383_v44  ;;  %1262 = vmatprep.mubr.f32.mxu1 %v326_v8  ;;  %v564_v23 = vld [vmem:[#allocation9 + $0x98] sm:$0xff]  ;;  %v579_v24 = vld [vmem:[#allocation9 + $0x110] sm:$0xff]  ;;  %v581_v36 = vld [vmem:[#allocation9 + $0x120] sm:$0xff] }
  0x9c   : > { %1388 = vmatprep.subr.bf16.mxu1 %v1387_v55  ;;  %v580_v25 = vld [vmem:[#allocation9 + $0x118] sm:$0xff]  ;;  %v322_v26 = vld [vmem:[#allocation2] sm:$0xff]  ;;  %v1403_v30 = vpack.c.bf16 %v564_v23, %v563_v21  ;;  %v549_v41 = vld [vmem:[#allocation9 + $0x20] sm:$0xff]  ;;  %v1439_v43 = vpack.c.bf16 %v582_v37, %v581_v36 }
  0x9d   : > { %1358 = vmatpush3.bf16.msra.mxu0 %v1357_v60  ;;  %v325_v27 = vld [vmem:[#allocation2 + $0x9] sm:$0xff]  ;;  %v547_v31 = vld [vmem:[#allocation9 + $0x10] sm:$0xff]  ;;  %v1435_v34 = vpack.c.bf16 %v580_v25, %v579_v24  ;;  %v550_v42 = vld [vmem:[#allocation9 + $0x28] sm:$0xff] }
  0x9e   : > { %1360 = vmatprep.subr.bf16.mxu0 %v1359_v61  ;;  %v548_v32 = vld [vmem:[#allocation9 + $0x18] sm:$0xff]  ;;  %v567_v44 = vld [vmem:[#allocation9 + $0xb0] sm:$0xff]  ;;  %v1409_v46 = vpack.c.bf16 %v550_v42, %v549_v41  ;;  %v569_v51 = vld [vmem:[#allocation9 + $0xc0] sm:$0xff] }
  0x9f   : > { %1390 = vmatpush3.bf16.msra.mxu1 %v1387_v55  ;;  %v323_v38 = vld [vmem:[#allocation2 + $0x8] sm:$0xff]  ;;  %v1405_v39 = vpack.c.bf16 %v548_v32, %v547_v31  ;;  %v551_v48 = vld [vmem:[#allocation9 + $0x30] sm:$0xff]  ;;  %v570_v52 = vld [vmem:[#allocation9 + $0xc8] sm:$0xff] }
  0xa0   : > { %1392 = vmatprep.subr.bf16.mxu1 %v1391_v1  ;;  %v568_v45 = vld [vmem:[#allocation9 + $0xb8] sm:$0xff]  ;;  %v1415_v53 = vpack.c.bf16 %v570_v52, %v569_v51  ;;  %v583_v54 = vld [vmem:[#allocation9 + $0x130] sm:$0xff]  ;;  %v553_v56 = vld [vmem:[#allocation9 + $0x40] sm:$0xff] }
  0xa1   : > { %1362 = vmatpush3.bf16.msra.mxu0 %v1361_v7  ;;  %v1411_v47 = vpack.c.bf16 %v568_v45, %v567_v44  ;;  %v552_v49 = vld [vmem:[#allocation9 + $0x38] sm:$0xff]  ;;  %v554_v58 = vld [vmem:[#allocation9 + $0x48] sm:$0xff]  ;;  %v571_v60 = vld [vmem:[#allocation9 + $0xd0] sm:$0xff] }
  0xa2   : > { %1364 = vmatprep.subr.bf16.mxu0 %v1363_v9  ;;  %v1413_v50 = vpack.c.bf16 %v552_v49, %v551_v48  ;;  %v584_v55 = vld [vmem:[#allocation9 + $0x138] sm:$0xff]  ;;  %v1417_v59 = vpack.c.bf16 %v554_v58, %v553_v56  ;;  %v585_v63 = vld [vmem:[#allocation9 + $0x140] sm:$0xff]  ;;  %v555_v2 = vld [vmem:[#allocation9 + $0x50] sm:$0xff]  ;;  %v1768_v49 = vmov 0.0|0.0  }
  0xa3   : > { %1394 = vmatpush3.bf16.msra.mxu1 %v1391_v1  ;;  %v1443_v57 = vpack.c.bf16 %v584_v55, %v583_v54  ;;  %v572_v61 = vld [vmem:[#allocation9 + $0xd8] sm:$0xff]  ;;  %v586_v1 = vld [vmem:[#allocation9 + $0x148] sm:$0xff]  ;;  %v573_v6 = vld [vmem:[#allocation9 + $0xe0] sm:$0xff] }
  0xa4   : > { %1396 = vmatprep.subr.bf16.mxu1 %v1395_v12  ;;  %v1419_v62 = vpack.c.bf16 %v572_v61, %v571_v60  ;;  %v1447_v3 = vpack.c.bf16 %v586_v1, %v585_v63  ;;  %v556_v4 = vld [vmem:[#allocation9 + $0x58] sm:$0xff]  ;;  %v574_v7 = vld [vmem:[#allocation9 + $0xe8] sm:$0xff]  ;;  %v587_v9 = vld [vmem:[#allocation9 + $0x150] sm:$0xff] }
  0xa5   : > { %1366 = vmatpush3.bf16.msra.mxu0 %v1365_v17  ;;  %v1421_v5 = vpack.c.bf16 %v556_v4, %v555_v2  ;;  %v1423_v8 = vpack.c.bf16 %v574_v7, %v573_v6  ;;  %v588_v10 = vld [vmem:[#allocation9 + $0x158] sm:$0xff]  ;;  %v557_v11 = vld [vmem:[#allocation9 + $0x60] sm:$0xff]  ;;  %v558_v13 = vld [vmem:[#allocation9 + $0x68] sm:$0xff] }
  0xa6   : > { %1400 = vmatprep.subr.bf16.mxu0 %v1399_v18  ;;  %v1425_v14 = vpack.c.bf16 %v558_v13, %v557_v11  ;;  %v575_v15 = vld [vmem:[#allocation9 + $0xf0] sm:$0xff]  ;;  %v576_v16 = vld [vmem:[#allocation9 + $0xf8] sm:$0xff]  ;;  %v589_v18 = vld [vmem:[#allocation9 + $0x160] sm:$0xff] }
  0xa7   : > { %1398 = vmatpush3.bf16.msra.mxu1 %v1395_v12  ;;  %v1451_v12 = vpack.c.bf16 %v588_v10, %v587_v9  ;;  %v1427_v17 = vpack.c.bf16 %v576_v16, %v575_v15  ;;  %v590_v19 = vld [vmem:[#allocation9 + $0x168] sm:$0xff]  ;;  %v559_v20 = vld [vmem:[#allocation9 + $0x70] sm:$0xff]  ;;  %v592_v25 = vld [vmem:[#allocation9 + $0x178] sm:$0xff]  ;;  %v758_v10 = vlaneseq }
  0xa8   : > { %1432 = vmatprep.subr.bf16.mxu1 %v1431_v22  ;;  %448 = vmatmul.mubr.f32.vlgmr.msra.gmra.mrb[0].mxu0 %v322_v26  ;;  %v1455_v21 = vpack.c.bf16 %v590_v19, %v589_v18  ;;  %v591_v24 = vld [vmem:[#allocation9 + $0x170] sm:$0xff]  ;;  %v856_v51 = vld [vmem:[#allocation10 + $0x18] sm:$0xff]  ;;  %v858_v54 = vld [vmem:[#allocation10 + $0x28] sm:$0xff] }
  0xa9   : > { %452 = vmatprep.mubr.f32.mxu0 %v325_v27  ;;  %1402 = vmatpush3.bf16.msra.mxu0 %v1401_v29  ;;  %v1459_v26 = vpack.c.bf16 %v592_v25, %v591_v24  ;;  %v859_v56 = vld [vmem:[#allocation10 + $0x30] sm:$0xff]  ;;  %v862_v60 = vld [vmem:[#allocation10 + $0x48] sm:$0xff]  ;;  %v864_v63 = vld [vmem:[#allocation10 + $0x58] sm:$0xff]  ;;  %v759_v16 = vshrl.u32 %v758_v10, 7 }
  0xaa   : > { %1263 = vmatmul.mubr.f32.vlgmr.msra.gmra.mrb[0].mxu1 %v327_v28  ;;  %1404 = vmatprep.subr.bf16.mxu0 %v1403_v30  ;;  %v1094_v30 = vld [vmem:[%s2106_s2] ss:$0 sm:$0xff]  ;;  %v865_v2 = vld [vmem:[#allocation10 + $0x60] sm:$0xff]  ;;  %v868_v6 = vld [vmem:[#allocation10 + $0x78] sm:$0xff] }
  0xab   : > { %1434 = vmatpush3.bf16.msra.mxu1 %v1431_v22  ;;  %v560_v22 = vld [vmem:[#allocation9 + $0x78] sm:$0xff]  ;;  %v1095_v13 = vld [vmem:[%s2108_s4] ss:$0 sm:$0xff] }
  0xac   : > { %1436 = vmatprep.subr.bf16.mxu1 %v1435_v34  ;;  %453 = vmatmul.mubr.f32.gmra.mrb[2].mxu0 %v323_v38  ;;  %v1429_v23 = vpack.c.bf16 %v560_v22, %v559_v20 }
  0xad   : > { %1406 = vmatpush3.bf16.msra.mxu0 %v1405_v39 }
  0xae   : > { %1408 = vmatprep.subr.bf16.mxu0 %v1407_v40 }
  0xaf   : > { %1438 = vmatpush3.bf16.msra.mxu1 %v1435_v34 }
  0xb0   : > { %1440 = vmatprep.subr.bf16.mxu1 %v1439_v43 }
  0xb1   : > { %1410 = vmatpush3.bf16.msra.mxu0 %v1409_v46  ;;  %v853_v46 = vld [vmem:[#allocation10] sm:$0xff] }
  0xb2   : > { %1412 = vmatprep.subr.bf16.mxu0 %v1411_v47  ;;  %v854_v47 = vld [vmem:[#allocation10 + $0x8] sm:$0xff] }
  0xb3   : > { %1442 = vmatpush3.bf16.msra.mxu1 %v1439_v43  ;;  %v1464_v48 = vpack.c.bf16 %v854_v47, %v853_v46 }
  0xb4   : > { %1444 = vmatprep.subr.bf16.mxu1 %v1443_v57 }
  0xb5   : > { %1414 = vmatpush3.bf16.msra.mxu0 %v1413_v50  ;;  %v855_v50 = vld [vmem:[#allocation10 + $0x10] sm:$0xff] }
  0xb6   : > { %1416 = vmatprep.subr.bf16.mxu0 %v1415_v53  ;;  %v1467_v52 = vpack.c.bf16 %v856_v51, %v855_v50  ;;  %v857_v53 = vld [vmem:[#allocation10 + $0x20] sm:$0xff] }
  0xb7   : > { %1446 = vmatpush3.bf16.msra.mxu1 %v1443_v57  ;;  %v1470_v55 = vpack.c.bf16 %v858_v54, %v857_v53  ;;  %v860_v57 = vld [vmem:[#allocation10 + $0x38] sm:$0xff] }
  0xb8   : > { %1448 = vmatprep.subr.bf16.mxu1 %v1447_v3  ;;  %v1473_v58 = vpack.c.bf16 %v860_v57, %v859_v56 }
  0xb9   : > { %1418 = vmatpush3.bf16.msra.mxu0 %v1417_v59  ;;  %v861_v59 = vld [vmem:[#allocation10 + $0x40] sm:$0xff] }
  0xba   : > { %1420 = vmatprep.subr.bf16.mxu0 %v1419_v62  ;;  %v1476_v61 = vpack.c.bf16 %v862_v60, %v861_v59  ;;  %v863_v62 = vld [vmem:[#allocation10 + $0x50] sm:$0xff] }
  0xbb   : > { %1450 = vmatpush3.bf16.msra.mxu1 %v1447_v3  ;;  %v1479_v1 = vpack.c.bf16 %v864_v63, %v863_v62  ;;  %v866_v3 = vld [vmem:[#allocation10 + $0x68] sm:$0xff] }
  0xbc   : > { %1452 = vmatprep.subr.bf16.mxu1 %v1451_v12  ;;  %v1482_v4 = vpack.c.bf16 %v866_v3, %v865_v2 }
  0xbd   : > { %1422 = vmatpush3.bf16.msra.mxu0 %v1421_v5  ;;  %v867_v5 = vld [vmem:[#allocation10 + $0x70] sm:$0xff] }
  0xbe   : > { %1424 = vmatprep.subr.bf16.mxu0 %v1423_v8  ;;  %v1485_v7 = vpack.c.bf16 %v868_v6, %v867_v5  ;;  %v1770_v8 = vmov 1983009808  }
  0xbf   : > { %1454 = vmatpush3.bf16.msra.mxu1 %v1451_v12  ;;  %v756_v9 = vunpack.c.l.s4 %v1770_v8 }
  0xc0   : > { %1456 = vmatprep.subr.bf16.mxu1 %v1455_v21 }
  0xc1   : > { %1426 = vmatpush3.bf16.msra.mxu0 %v1425_v14  ;;  %v757_v15 = vunpack.c.0.s8 %v756_v9 }
  0xc2   : > { %1428 = vmatprep.subr.bf16.mxu0 %v1427_v17 }
  0xc3   : > { %1458 = vmatpush3.bf16.msra.mxu1 %v1455_v21 }
  0xc4   : > { %1460 = vmatprep.subr.bf16.mxu1 %v1459_v26 }
  0xc5   : > { %1430 = vmatpush3.bf16.msra.mxu0 %v1429_v23 }
  0xc6   : > { %1463 = vmatprep.subr.bf16.mxu0 %v1768_v49 }
  0xc7   : > { %1462 = vmatpush3.bf16.msra.mxu1 %v1459_v26 }
 0x17b   : > { %v1133_v27 = vpop.f32.mrb[0].mxu0 }
 0x17c   : > { %v1134_v28 = vpop.f32.mrb[1].mxu0 }
 0x17d   : > { %v1264_v29 = vpop.f32.mrb[0].mxu1  ;;  %v1135_v31 = vadd.f32 %v1134_v28, %v1133_v27 }
 0x17e   : > { %v524_v32 = vpop.f32.mrb[1].mxu1 }
 0x17f   : > { %v1136_v33 = vpop.f32.mrb[2].mxu0  ;;  %v450_v34 = vadd.f32 %v1135_v31, %v1094_v30 }
 0x180   : > { %v1137_v35 = vpop.f32.mrb[3].mxu0 }
 0x181   : > { %v525_v36 = vadd.f32 %v524_v32, %v450_v34  ;;  %v1138_v37 = vadd.f32 %v1137_v35, %v1136_v33 }
 0x183   : > { %v533_v38 = vmax.f32 %v525_v36, 0.0  ;;  %v455_v39 = vadd.f32 %v1138_v37, %v1094_v30 }
 0x185   : > { %537 = vst [vmem:[#allocation3 + $0x1] sm:$0xff] %v533_v38  ;;  %v530_v40 = vadd.f32 %v1264_v29, %v455_v39  ;;  %664 = vmatprep.mubr.f32.mxu0 %v533_v38 }
 0x187   : > { %v534_v41 = vmax.f32 %v530_v40, 0.0 }
 0x189   : > { %538 = vst [vmem:[#allocation3 + $0x9] sm:$0xff] %v534_v41 }
 0x18c   : > { %v539_v42 = vld [vmem:[#allocation3] sm:$0xff] }
 0x18d   : > { %665 = vmatmul.mubr.f32.vlgmr.msra.gmra.mrb[4].mxu0 %v539_v42 }
 0x18e   : > { %669 = vmatprep.mubr.f32.mxu0 %v534_v41  ;;  %1465 = vmatpush3.bf16.msra.mxu0 %v1464_v48 }
 0x18f   : > { %1466 = vmatprep.subr.bf16.mxu0 %v1768_v49 }
 0x190   : > { %v543_v43 = vld [vmem:[#allocation3 + $0x2] sm:$0xff]  ;;  %v544_v45 = vld [vmem:[#allocation3 + $0xa] sm:$0xff] }
 0x191   : > { %v540_v44 = vld [vmem:[#allocation3 + $0x8] sm:$0xff]  ;;  %1297 = vmatprep.mubr.f32.mxu1 %v543_v43 }
 0x192   : > { %670 = vmatmul.mubr.f32.gmra.mrb[6].mxu0 %v540_v44  ;;  %1298 = vmatmul.mubr.f32.vlgmr.msra.gmra.mrb[2].mxu1 %v544_v45 }
 0x193   : > { %1468 = vmatpush3.bf16.msra.mxu0 %v1467_v52  ;;  %1332 = vmatprep.mubr.msk.f32.mxu0 %vm1769_vm1, %v1767_v0  ;;  %v760_v0 = vsub.s32 %v757_v15, %v759_v16 }
 0x194   : > { %1469 = vmatprep.subr.bf16.mxu0 %v1768_v49 }
 0x197   : > { %1471 = vmatpush3.bf16.msra.mxu0 %v1470_v55 }
 0x198   : > { %1472 = vmatprep.subr.bf16.mxu0 %v1768_v49 }
 0x19b   : > { %1474 = vmatpush3.bf16.msra.mxu0 %v1473_v58 }
 0x19c   : > { %1475 = vmatprep.subr.bf16.mxu0 %v1768_v49 }
 0x19f   : > { %1477 = vmatpush3.bf16.msra.mxu0 %v1476_v61 }
 0x1a0   : > { %1478 = vmatprep.subr.bf16.mxu0 %v1768_v49 }
 0x1a3   : > { %1480 = vmatpush3.bf16.msra.mxu0 %v1479_v1 }
 0x1a4   : > { %1481 = vmatprep.subr.bf16.mxu0 %v1768_v49 }
 0x1a7   : > { %1483 = vmatpush3.bf16.msra.mxu0 %v1482_v4 }
 0x1a8   : > { %1484 = vmatprep.subr.bf16.mxu0 %v1768_v49 }
 0x1ab   : > { %1486 = vmatpush3.bf16.msra.mxu0 %v1485_v7 }
 0x260   : > { %v1189_v11 = vpop.f32.mrb[4].mxu0 }
 0x261   : > { %v1190_v12 = vpop.f32.mrb[5].mxu0 }
 0x262   : > { %v1191_v14 = vadd.f32 %v1190_v12, %v1189_v11 }
 0x264   : > { %v667_v18 = vadd.f32 %v1191_v14, %v1095_v13 }
 0x265   : > { %v1192_v17 = vpop.f32.mrb[6].mxu0  ;;  %v1299_v19 = vpop.f32.mrb[2].mxu1 }
 0x266   : > { %v1193_v20 = vpop.f32.mrb[7].mxu0  ;;  %v741_v22 = vpop.f32.mrb[3].mxu1 }
 0x267   : > { %v1194_v21 = vadd.f32 %v1193_v20, %v1192_v17  ;;  %v742_v23 = vadd.f32 %v741_v22, %v667_v18 }
 0x269   : > { %v672_v24 = vadd.f32 %v1194_v21, %v1095_v13  ;;  %v750_v25 = vmax.f32 %v742_v23, 0.0 }
 0x26b   : > { %v747_v26 = vadd.f32 %v1299_v19, %v672_v24  ;;  %v754_v27 = vcombine.high %v750_v25, %v750_v25  ;;  %v761_v28 = vrot.slane %v750_v25, %v760_v0 }
 0x26d   : > { %v751_v29 = vmax.f32 %v747_v26, 0.0  ;;  %v768_v30 = vrot.slane %v754_v27, %v760_v0  ;;  %v769_v31 = vcombine.high %v761_v28, %v761_v28  ;;  %v797_v32 = vsel %vm796_vm2, %v761_v28, -inf }
 0x26e   : > { %v798_v35 = vrot.slane %v797_v32, 4 }
 0x26f   : > { %v771_v33 = vcombine.high %v751_v29, %v751_v29  ;;  %v778_v34 = vrot.slane %v751_v29, %v760_v0  ;;  %v770_v36 = vcombine.high %v768_v30, %v768_v30  ;;  %v804_v37 = vsel %vm796_vm2, %v769_v31, -inf }
 0x270   : > { %v811_v38 = vsel %vm796_vm2, %v768_v30, -inf  ;;  %v799_v42 = vmax.f32 %v797_v32, %v798_v35  ;;  %v805_v44 = vrot.slane %v804_v37, 4 }
 0x271   : > { %v785_v39 = vrot.slane %v771_v33, %v760_v0  ;;  %v786_v40 = vcombine.high %v778_v34, %v778_v34  ;;  %v825_v41 = vsel %vm796_vm2, %v778_v34, -inf  ;;  %v812_v45 = vrot.slane %v811_v38, 4 }
 0x272   : > { %v826_v43 = vrot.slane %v825_v41, 4  ;;  %v818_v46 = vsel %vm796_vm2, %v770_v36, -inf  ;;  %v800_v50 = vrot.slane %v799_v42, 2  ;;  %v806_v54 = vmax.f32 %v804_v37, %v805_v44 }
 0x273   : > { %v787_v47 = vcombine.high %v785_v39, %v785_v39  ;;  %v832_v48 = vsel %vm796_vm2, %v786_v40, -inf  ;;  %v839_v49 = vsel %vm796_vm2, %v785_v39, -inf  ;;  %v813_v57 = vmax.f32 %v811_v38, %v812_v45 }
 0x274   : > { %v827_v51 = vmax.f32 %v825_v41, %v826_v43  ;;  %v833_v52 = vrot.slane %v832_v48, 4  ;;  %v840_v53 = vrot.slane %v839_v49, 4  ;;  %v801_v56 = vmax.f32 %v799_v42, %v800_v50 }
 0x275   : > { %v846_v55 = vsel %vm796_vm2, %v787_v47, -inf  ;;  %v819_v58 = vrot.slane %v818_v46, 4  ;;  %v807_v63 = vrot.slane %v806_v54, 2  ;;  %v814_v1 = vrot.slane %v813_v57, 2 }
 0x276   : > { %v828_v59 = vrot.slane %v827_v51, 2  ;;  %v834_v60 = vmax.f32 %v832_v48, %v833_v52  ;;  %v841_v61 = vmax.f32 %v839_v49, %v840_v53  ;;  %v847_v62 = vrot.slane %v846_v55, 4 }
 0x277   : > { %v820_v2 = vmax.f32 %v818_v46, %v819_v58  ;;  %v802_v7 = vrot.slane %v801_v56, 1  ;;  %v808_v8 = vmax.f32 %v806_v54, %v807_v63  ;;  %v815_v9 = vmax.f32 %v813_v57, %v814_v1 }
 0x278   : > { %v829_v3 = vmax.f32 %v827_v51, %v828_v59  ;;  %v835_v4 = vrot.slane %v834_v60, 2  ;;  %v842_v5 = vrot.slane %v841_v61, 2  ;;  %v848_v6 = vmax.f32 %v846_v55, %v847_v62 }
 0x279   : > { %v821_v10 = vrot.slane %v820_v2, 2  ;;  %v809_v14 = vrot.slane %v808_v8, 1  ;;  %v816_v15 = vrot.slane %v815_v9, 1  ;;  %v803_v20 = vmax.f32 %v801_v56, %v802_v7 }
 0x27a   : > { %v836_v11 = vmax.f32 %v834_v60, %v835_v4  ;;  %v843_v12 = vmax.f32 %v841_v61, %v842_v5  ;;  %v849_v13 = vrot.slane %v848_v6, 2  ;;  %v830_v17 = vrot.slane %v829_v3, 1 }
 0x27b   : > { %v822_v16 = vmax.f32 %v820_v2, %v821_v10  ;;  %v810_v21 = vmax.f32 %v808_v8, %v809_v14  ;;  %v817_v22 = vmax.f32 %v815_v9, %v816_v15 }
 0x27c   : > { %v837_v18 = vrot.slane %v836_v11, 1  ;;  %v850_v19 = vmax.f32 %v848_v6, %v849_v13  ;;  %v844_v23 = vrot.slane %v843_v12, 1  ;;  %v831_v28 = vmax.f32 %v829_v3, %v830_v17 }
 0x27d   : > { %v823_v0 = vrot.slane %v822_v16, 1  ;;  %v878_v26 = vsel %vm877_vm3, %v810_v21, %v803_v20 }
 0x27e   : > { %v851_v24 = vrot.slane %v850_v19, 1  ;;  %v838_v27 = vmax.f32 %v836_v11, %v837_v18  ;;  %v880_v29 = vsel %vm879_vm4, %v817_v22, %v878_v26  ;;  %v845_v32 = vmax.f32 %v843_v12, %v844_v23 }
 0x27f   : > { %v824_v25 = vmax.f32 %v822_v16, %v823_v0 }
 0x280   : > { %v852_v30 = vmax.f32 %v850_v19, %v851_v24 }
 0x281   : > { %v882_v31 = vsel %vm881_vm5, %v824_v25, %v880_v29 }
 0x282   : > { %v884_v33 = vsel %vm883_vm6, %v831_v28, %v882_v31 }
 0x283   : > { %v886_v34 = vsel %vm885_vm7, %v838_v27, %v884_v33 }
 0x284   : > { %v888_v35 = vsel %vm887_vm8, %v845_v32, %v886_v34 }
 0x285   : > { %v890_v36 = vsel %vm889_vm9, %v852_v30, %v888_v35 }
 0x286   : > { %1333 = vmatmul.mubr.f32.vlgmr.msra.gmra.mrb[8].mxu0 %v890_v36 }
 0x359   : > { %v958_v37 = vpop.f32.mrb[8].mxu0 }
 0x35a   : > { %v1334_v38 = vpop.f32.mrb[9].mxu0  ;;  %962 = vrot.lane.b32.xlu0 %v958_v37, %s1771_s26 }
 0x3cc   : > { %v963_v39 = vpop.permute.xlu0 %962 }
 0x3cd   : > { %v964_v40 = vmax.f32 %v958_v37, %v963_v39 }
 0x3cf   : > { %965 = vst [vmem:[%s313_s8] sm:$0xff] %v964_v40 }
 0x3d0   : > { %1698 = shalt.err (!%p1695_p4)
}
 0x3d1   : > { %s1699_s13 = scalar_lea.hbm %s2060_s19, 128  ;;  %s1703_s26 = scalar_lea.hbm %s2110_s6, 256 }
 0x3d2   : > { %p1700_p9 = scmp.ne.s32.totalorder %s2060_s19, %s1699_s13  ;;  %p1704_p8 = scmp.lt.u32.totalorder %s2060_s19, %s2110_s6 }
 0x3d3   : > { %p1705_p13 = scmp.lt.u32.totalorder %s1703_s26, %s1699_s13  ;;  %p1707_p10 = scmp.lt.u32.totalorder %s1699_s13, %s2060_s19 }
 0x3d4   : > { %p1701_p0 = pnand %p1700_p9, %p1962_p5 }
 0x3d5   : > { %p1706_p6 = por %p1705_p13, %p1704_p8 }
 0x3d6   : > { %p1702_p11 = pneg %p1701_p0 }
 0x3d7   : > { %p1708_p3 = por %p1707_p10, %p1706_p6 }
 0x3d9   : > { %p1709_p7 = pnand %p1708_p3, %p1702_p11 }
 0x3db   : > { %1712 = shalt.err (!%p1709_p7)
}
 0x3dc   : > { %1501 = dma.vmem_to_hbm [thread:$0]  (%p1962_p5), %s2062_s17, 128, %s2060_s19, %s967_s7  }
 0x3dd PF: > { %s992_s8 = sand.u32 1, %s1747_s21   ;;  %p2128_p12 = scmp.ne.s32.totalorder %s2115_s28, 0 }
 0x3de   : > { %p2129_p1 = scmp.ge.s32.totalorder %s1759_s24, 2  ;;  %s993_s12 = scalar_lea.sflag [#allocation6], %s992_s8 }
 0x3e0   : > { %p1518_p2 = pnand %p2129_p1, %p2128_p12 }
 0x3e2   : > { %1742 = dma.done.wait (!%p1518_p2), %s993_s12, 128  }
 0x3e3   : > { %1744 = vsyncadd (!%p1518_p2), %s993_s12, 4294967168  ;;  %p21_p4 = scmp.ge.s32.totalorder %s1948_s18, 4   ;;  %s2130_s21 = smov %s1751_s22 }
 0x3e4   : > { %s2131_s22 = smov %s1755_s23  ;;  %s2132_s23 = smov %s1958_s14 }
 0x3e5   : > { %s2133_s24 = smov %s1948_s18  ;;  %23 = sbr.rel (!%p21_p4) target bundleno = 7 (0x7), region = 101 }
 0x3ec   :  { %998 = vsyncpa [#allocation5], 1 }
 0x3ed   :  { %1000 = vsyncpa [#allocation5 + $0x1], 1 }
 0x3ee   :  { %1001 = vsyncpa [#allocation8], 1 }
 0x3ef   :  { %1002 = vsyncpa [#allocation11], 1 }
 0x3f0   :  { %1003 = vsyncpa [#allocation6], 1 }
 0x3f1   :  { %1005 = vsyncpa [#allocation6 + $0x1], 1 }

</bundles_post_ra>
